<compile_context>
chip_gen: v5e
topology: v5e:2x2
jax: 0.10.0
libtpu: 0.0.40
codegen_flags: <defaults>
</compile_context>

<pallas_src>
import jax
import jax.numpy as jnp
from jax import lax
from jax.experimental import pallas as pl
from jax.experimental.pallas import tpu as pltpu

LN_EPS = 1e-5  # torch.nn.LayerNorm default


# ---------------------------------------------------------------------------
# Kernels
# ---------------------------------------------------------------------------
def _final_layernorm_kernel(x_ref, g_ref, b_ref, o_ref):
    # x_ref/g_ref/b_ref: (1, H); o_ref: (1, H) in the matmul compute dtype.
    x = x_ref[...].astype(jnp.float32)
    mean = jnp.mean(x, axis=-1, keepdims=True)
    xc = x - mean
    var = jnp.mean(xc * xc, axis=-1, keepdims=True)
    xn = xc * lax.rsqrt(var + LN_EPS)
    xn = xn * g_ref[...].astype(jnp.float32) + b_ref[...].astype(jnp.float32)
    o_ref[...] = xn.astype(o_ref.dtype)


def _lm_head_kernel(x_ref, w_ref, b_ref, o_ref):
    # x_ref: (1, H)        normalized last-token activation (weight dtype)
    # w_ref: (H, tile_v)   lm-head weight block, native dtype (no upcast)
    # b_ref: (1, tile_v)   lm-head bias block
    # o_ref: (1, tile_v)   f32 logits block (lane-dense stores)
    logits = jnp.dot(x_ref[...], w_ref[...], preferred_element_type=jnp.float32)
    o_ref[...] = (logits + b_ref[...].astype(jnp.float32)).astype(o_ref.dtype)


# ---------------------------------------------------------------------------
# Wrapper
# ---------------------------------------------------------------------------
def _round_up(x, m):
    return ((x + m - 1) // m) * m


def _pick_tile_v(V, H, w_itemsize, target_block_bytes):
    """Largest 128-aligned vocab tile giving ~target_block_bytes per weight block."""
    cols = max(128, target_block_bytes // max(1, H * w_itemsize))
    tile_v = max(128, (cols // 128) * 128)
    tile_v = min(tile_v, _round_up(V, 128))
    # Keep >= 2 grid steps so the parallel vocab axis can be sharded across
    # both TensorCores on v7x (and load-balances better everywhere).
    if tile_v >= V and V > 128:
        tile_v = max(128, _round_up(pl.cdiv(V, 2), 128))
    return tile_v


def prepare_lm_head(lm_weight, lm_bias, ln_gamma, ln_beta):
    """One-time weight preparation (do at load time, NOT per forward call).

    Transposes the torch-style (V, H) linear weight to (H, V) so the kernel
    streams it with vocab on lanes.  Dtypes are left untouched: cast to bf16
    (or int8 on v6e / fp8 on v7x) here to cut HBM traffic of the weight stream.
    """
    V, H = lm_weight.shape
    return {
        "w_t": lm_weight.T,              # (H, V)
        "bias": lm_bias.reshape(1, V),   # (1, V)
        "gamma": ln_gamma.reshape(1, H),
        "beta": ln_beta.reshape(1, H),
    }


def lm_forward(hidden_states, params, *, tile_v=None,
               target_block_bytes=8 * 1024 * 1024):
    """hidden_states: (..., H).  Returns (1, 1, V) f32 logits."""
    w_t = params["w_t"]
    H, V = w_t.shape
    w_itemsize = jnp.dtype(w_t.dtype).itemsize

    # Glue: .view(-1, H)[-1] -> last token across (batch*seq).
    x_last = hidden_states.reshape(-1, H)[-1:]          # (1, H)

    # --- final_layernorm: one tiny grid-less kernel (runs once, not per tile).
    vmem = pl.BlockSpec(memory_space=pltpu.MemorySpace.VMEM)
    xn = pl.pallas_call(
        _final_layernorm_kernel,
        out_shape=jax.ShapeDtypeStruct((1, H), w_t.dtype),
        in_specs=[vmem, vmem, vmem],
        out_specs=vmem,
    )(x_last, params["gamma"], params["beta"])

    # --- lm head: stream (H, tile_v) weight blocks over a parallel vocab grid.
    if tile_v is None:
        tile_v = _pick_tile_v(V, H, w_itemsize, target_block_bytes)
    grid = (pl.cdiv(V, tile_v),)

    # Explicit scoped-VMEM budget derived from the real (double-buffered) blocks.
    w_block = H * tile_v * w_itemsize
    b_block = tile_v * jnp.dtype(params["bias"].dtype).itemsize
    o_block = tile_v * 4
    needed = 2 * (w_block + b_block + o_block) + H * w_itemsize + (2 << 20)
    vmem_limit = int(max(needed, 32 * 1024 * 1024))

    logits = pl.pallas_call(
        _lm_head_kernel,
        out_shape=jax.ShapeDtypeStruct((1, V), jnp.float32),
        grid_spec=pltpu.PrefetchScalarGridSpec(
            num_scalar_prefetch=0,
            grid=grid,
            in_specs=[
                pl.BlockSpec((1, H), lambda j: (0, 0)),        # xn (resident)
                pl.BlockSpec((H, tile_v), lambda j: (0, j)),   # weight block
                pl.BlockSpec((1, tile_v), lambda j: (0, j)),   # bias block
            ],
            out_specs=pl.BlockSpec((1, tile_v), lambda j: (0, j)),
        ),
        compiler_params=pltpu.CompilerParams(
            dimension_semantics=("parallel",),
            vmem_limit_bytes=vmem_limit,
        ),
    )(xn, w_t, params["bias"])

    return logits.reshape(1, 1, V)


# ---------------------------------------------------------------------------
# Reference + demo
# ---------------------------------------------------------------------------
def _reference(hidden_states, ln_gamma, ln_beta, lm_weight, lm_bias):
    H = hidden_states.shape[-1]
    x = hidden_states.reshape(-1, H)[-1].reshape(1, 1, H).astype(jnp.float32)
    mean = jnp.mean(x, axis=-1, keepdims=True)
    var = jnp.mean((x - mean) ** 2, axis=-1, keepdims=True)
    xn = (x - mean) / jnp.sqrt(var + LN_EPS)
    xn = xn * ln_gamma.astype(jnp.float32) + ln_beta.astype(jnp.float32)
    return (jnp.einsum("abh,vh->abv", xn, lm_weight.astype(jnp.float32))
            + lm_bias.astype(jnp.float32))


if __name__ == "__main__":
    B, S, H, V = 2, 8, 128, 512  # small synthetic shapes

    key = jax.random.PRNGKey(0)
    k1, k2, k3, k4, k5 = jax.random.split(key, 5)
    hidden_states = jax.random.normal(k1, (B, S, H), dtype=jnp.float32)
    ln_gamma = 1.0 + 0.05 * jax.random.normal(k2, (H,), dtype=jnp.float32)
    ln_beta = 0.05 * jax.random.normal(k3, (H,), dtype=jnp.float32)
    lm_weight = 0.02 * jax.random.normal(k4, (V, H), dtype=jnp.float32)  # torch (out, in)
    lm_bias = 0.01 * jax.random.normal(k5, (V,), dtype=jnp.float32)

    # One-time weight prep (outside the per-call hot path).
    params = prepare_lm_head(lm_weight, lm_bias, ln_gamma, ln_beta)

    out = lm_forward(hidden_states, params)
    out = jax.block_until_ready(out)

    ref = _reference(hidden_states, ln_gamma, ln_beta, lm_weight, lm_bias)
    assert out.shape == (1, 1, V), out.shape
    assert jnp.allclose(out, ref, atol=1e-4, rtol=1e-4), float(jnp.max(jnp.abs(out - ref)))

    print("KERNEL_OK")
</pallas_src>

<mosaic_0001>
module attributes {stable_mosaic.version = 11 : i64} {
  func.func @_final_layernorm_kernel(%arg0: memref<1x128xf32, #tpu.memory_space<vmem>>, %arg1: memref<1x128xf32, #tpu.memory_space<vmem>>, %arg2: memref<1x128xf32, #tpu.memory_space<vmem>>, %arg3: memref<1x128xf32, #tpu.memory_space<vmem>>) attributes {dimension_semantics = [], scalar_prefetch = 0 : i64, scratch_operands = 0 : i64, tpu.core_type = #tpu.core_type<tc>} {
    %c0 = arith.constant 0 : index
    %c0_0 = arith.constant 0 : index
    %0 = vector.load %arg0[%c0, %c0_0] : memref<1x128xf32, #tpu.memory_space<vmem>>, vector<1x128xf32>
    %cst = arith.constant dense<0.000000e+00> : vector<1xf32>
    %1 = vector.multi_reduction <add>, %0, %cst [1] : vector<1x128xf32> to vector<1xf32>
    %2 = vector.shape_cast %1 : vector<1xf32> to vector<1x1xf32>
    %cst_1 = arith.constant 1.280000e+02 : f32
    %3 = vector.broadcast %cst_1 : f32 to vector<1x1xf32>
    %4 = arith.divf %2, %3 : vector<1x1xf32>
    %5 = vector.broadcast %4 : vector<1x1xf32> to vector<1x128xf32>
    %6 = arith.subf %0, %5 : vector<1x128xf32>
    %7 = arith.mulf %6, %6 : vector<1x128xf32>
    %cst_2 = arith.constant dense<0.000000e+00> : vector<1xf32>
    %8 = vector.multi_reduction <add>, %7, %cst_2 [1] : vector<1x128xf32> to vector<1xf32>
    %9 = vector.shape_cast %8 : vector<1xf32> to vector<1x1xf32>
    %cst_3 = arith.constant 1.280000e+02 : f32
    %10 = vector.broadcast %cst_3 : f32 to vector<1x1xf32>
    %11 = arith.divf %9, %10 : vector<1x1xf32>
    %cst_4 = arith.constant 9.99999974E-6 : f32
    %12 = vector.broadcast %cst_4 : f32 to vector<1x1xf32>
    %13 = arith.addf %11, %12 : vector<1x1xf32>
    %14 = math.rsqrt %13 : vector<1x1xf32>
    %15 = vector.broadcast %14 : vector<1x1xf32> to vector<1x128xf32>
    %16 = arith.mulf %6, %15 : vector<1x128xf32>
    %c0_5 = arith.constant 0 : index
    %c0_6 = arith.constant 0 : index
    %17 = vector.load %arg1[%c0_5, %c0_6] : memref<1x128xf32, #tpu.memory_space<vmem>>, vector<1x128xf32>
    %18 = arith.mulf %16, %17 : vector<1x128xf32>
    %c0_7 = arith.constant 0 : index
    %c0_8 = arith.constant 0 : index
    %19 = vector.load %arg2[%c0_7, %c0_8] : memref<1x128xf32, #tpu.memory_space<vmem>>, vector<1x128xf32>
    %20 = arith.addf %18, %19 : vector<1x128xf32>
    %c0_9 = arith.constant 0 : index
    %c0_10 = arith.constant 0 : index
    %21 = vector.load %arg3[%c0_9, %c0_10] : memref<1x128xf32, #tpu.memory_space<vmem>>, vector<1x128xf32>
    tpu.vector_store %arg3[%c0_9, %c0_10], %20 {strides = array<i32>} : memref<1x128xf32, #tpu.memory_space<vmem>>, vector<1x128xf32>,
    return
  }
}

</mosaic_0001>

<bundles_post_ra>
// kernel: tpu_custom_call.1
= control target key start
LH: loop header
LB: loop body
LE: loop exit
PB: predicated region body
PF: predicated region fallthrough
CT: control target
= control target key end

     0   :  { %8 = vsyncpa [#allocation3], 0  ;;  %s221_s0 = inlined_call_operand.hbm [shape: f32[1,128], index: 0, kind: input, shape index: {}]   ;;  %s222_s1 = inlined_call_operand.hbm [shape: f32[1,128], index: 1, kind: input, shape index: {}]   ;;  %s223_s2 = inlined_call_operand.vmem [shape: f32[1,128], index: 2, kind: input, shape index: {}]   ;;  %s224_s3 = inlined_call_operand.hbm [shape: f32[1,128], index: 3, kind: output, shape index: {}]  }
   0x1   :  { %9 = vsyncpa [#allocation6], 0 }
   0x2   :  { %10 = vsyncpa [#allocation4], 0  ;;  %s16_s14 = sshll.u32 %s221_s0, 4  ;;  %s183_s15 = smov [#allocation2]   ;;  %s17_s14 = int_to_ptr.hbm [resolvable:$true] %s16_s14 }
   0x3   :  { %s18_s16 = sshll.u32 %s183_s15, 4  ;;  %s27_s19 = sshll.u32 %s222_s1, 4  ;;  %s19_s16 = int_to_ptr.vmem [resolvable:$true] %s18_s16  ;;  %s28_s19 = int_to_ptr.hbm [resolvable:$true] %s27_s19 }
   0x4   :  { %21 = dma.hbm_to_vmem [thread:$0]  %s17_s14, 16, %s19_s16, [#allocation3]  }
   0x5   :  { %s184_s20 = smov [#allocation5]  }
   0x6   :  { %s29_s21 = sshll.u32 %s184_s20, 4  ;;  %s30_s21 = int_to_ptr.vmem [resolvable:$true] %s29_s21 }
   0x7   :  { %32 = dma.hbm_to_vmem [thread:$0]  %s28_s19, 16, %s30_s21, [#allocation6]  }
   0x8   :  { %177 = dma.done.wait [#allocation3], 16  }
   0x9   :  { %178 = vsyncadd [#allocation3], 4294967280 }
   0xa   :  { %179 = dma.done.wait [#allocation6], 16  }
   0xb   :  { %180 = vsyncadd [#allocation6], 4294967280  ;;  %vm44_vm0 = vcmask 1040384   ;;  %v43_v0 = vld [vmem:[#allocation2] sm:$0x1]  ;;  %v185_v2 = vmov 128.0  }
   0xc   :  { %v45_v1 = vsel %vm44_vm0, %v43_v0, 0.0  ;;  %101 = vrcp.f32 %v185_v2  ;;  %v74_v24 = vld [vmem:[#allocation5] sm:$0x1]  ;;  %v76_v26 = vld [vmem:[%s223_s2] sm:$0x1]  ;;  %s186_s22 = smov [#allocation7]  }
   0xd   :  { %46 = vadd.xlane.f32.xlu0 %v45_v1  ;;  %s84_s23 = sshll.u32 %s186_s22, 4  ;;  %s86_s26 = sshll.u32 %s224_s3, 4  ;;  %s85_s23 = int_to_ptr.vmem [resolvable:$true] %s84_s23  ;;  %s87_s26 = int_to_ptr.hbm [resolvable:$true] %s86_s26 }
  0x12   :  { %v102_v3 = vpop.eup %101 }
  0x13   :  { %v49_v4 = vmul.f32 128.0, %v102_v3  ;;  %vm53_vm1 = vweird.f32 %v102_v3 }
  0x15   :  { %v50_v5 = vsub.f32 1.0, %v49_v4 }
  0x17   :  { %v51_v6 = vmul.f32 %v102_v3, %v50_v5 }
  0x19   :  { %v52_v7 = vadd.f32 %v102_v3, %v51_v6 }
  0x1b   :  { %v54_v8 = vsel %vm53_vm1, %v102_v3, %v52_v7 }
  0x80   :  { %v47_v9 = vpop.xlane.xlu0 %46 }
  0x81   :  { %v55_v10 = vmul.f32 %v54_v8, %v47_v9 }
  0x83   :  { %v56_v11 = vsub.f32 %v43_v0, %v55_v10 }
  0x85   :  { %v57_v12 = vmul.f32 %v56_v11, %v56_v11 }
  0x87   :  { %v58_v13 = vsel %vm44_vm0, %v57_v12, 0.0 }
  0x88   :  { %59 = vadd.xlane.f32.xlu0 %v58_v13 }
  0xfb   :  { %v60_v14 = vpop.xlane.xlu0 %59 }
  0xfc   :  { %v61_v15 = vmul.f32 %v60_v14, %v54_v8 }
  0xfe   :  { %v62_v16 = vadd.f32 1e-05, %v61_v15 }
 0x100   :  { %103 = vrsqrt.f32 %v62_v16  ;;  %vm69_vm3 = vweird.f32 %v62_v16 }
 0x106   :  { %v104_v17 = vpop.eup %103 }
 0x107   :  { %v64_v18 = vmul.f32 %v104_v17, %v62_v16  ;;  %vm70_vm2 = vweird.f32 %v104_v17 }
 0x108   :  { %vm71_vm4 = vmor %vm69_vm3, %vm70_vm2 }
 0x109   :  { %v65_v19 = vmul.f32 %v104_v17, %v64_v18 }
 0x10b   :  { %v66_v20 = vmul.f32 0.5, %v65_v19 }
 0x10d   :  { %v67_v21 = vsub.f32 1.5, %v66_v20 }
 0x10f   :  { %v68_v22 = vmul.f32 %v104_v17, %v67_v21 }
 0x111   :  { %v72_v23 = vsel %vm71_vm4, %v104_v17, %v68_v22 }
 0x112   :  { %v73_v25 = vmul.f32 %v72_v23, %v56_v11 }
 0x114   :  { %v75_v27 = vmul.f32 %v74_v24, %v73_v25 }
 0x116   :  { %v77_v28 = vadd.f32 %v76_v26, %v75_v27 }
 0x118   :  { %78 = vst [vmem:[#allocation7] sm:$0x1] %v77_v28 }
 0x119   :  { %89 = dma.vmem_to_hbm [thread:$0]  %s85_s23, 16, %s87_s26, [#allocation4]  }
 0x11a   :  { %181 = dma.done.wait [#allocation4], 16  }
 0x11b   :  { %182 = vsyncadd [#allocation4], 4294967280 }
 0x11c   :  { %94 = vsyncpa [#allocation3], 1 }
 0x11d   :  { %95 = vsyncpa [#allocation6], 1 }
 0x11e   :  { %96 = vsyncpa [#allocation4], 1 }

</bundles_post_ra>
